<compile_context>
chip_gen: v7x
topology: tpu7x:2x2x1
jax: 0.10.0
libtpu: 0.0.40
codegen_flags: <defaults>
</compile_context>

<pallas_src>
import jax
import jax.numpy as jnp
from jax.experimental import pallas as pl
from jax.experimental.pallas import tpu as pltpu


def _attention_kernel(hidp_ref, enc_ref, we_ref, v_ref, out_ref):
    # hidp_ref: (Bb, dec)        precomputed hidden @ W_h + b for this batch block
    # enc_ref : (S, Bb, 2E)      encoder outputs, original seq-major layout
    # we_ref  : (2E, dec)        encoder part of attn weight (transposed, resident)
    # v_ref   : (1, dec)         v weight kept as a row
    # out_ref : (Bb, S_pad)      lane-dense attention weights (S padded to 128-mult)
    src_len, bb, enc2 = enc_ref.shape
    dec = we_ref.shape[1]
    s_pad = out_ref.shape[1]

    # One big-M MXU matmul: layout-free collapse (S, Bb, 2E) -> (S*Bb, 2E)
    # (Bb is a multiple of 8, so no relayout / no VMEM copy).
    enc2d = enc_ref[...].reshape(src_len * bb, enc2)
    energy = jnp.dot(enc2d, we_ref[...], preferred_element_type=jnp.float32)

    # Add the per-row hidden projection as a broadcast operand (never materialize
    # a (Bb*S, dec) hid temporary), then tanh on the EUP.
    energy = energy.reshape(src_len, bb, dec) + hidp_ref[...][None, :, :]
    energy = jnp.tanh(energy)

    # v-projection on the VPU/XLU: multiply + lane reduce (no N=1 MXU matmul).
    scores_sb = jnp.sum(energy * v_ref[...][None, :, :], axis=-1)     # (S, Bb)

    # Tiny transpose to put src_len on the lane axis, then pad lanes to a
    # multiple of 128 with -1e30 so exp() of padded lanes underflows to 0 and
    # the final store is a lane-dense vst.
    scores = scores_sb.T                                               # (Bb, S)
    if s_pad > src_len:
        pad = jnp.full((bb, s_pad - src_len), -1e30, dtype=jnp.float32)
        scores = jnp.concatenate([scores, pad], axis=1)                # (Bb, S_pad)

    # Lane-axis softmax.
    m = jnp.max(scores, axis=-1, keepdims=True)
    e = jnp.exp(scores - m)
    s = jnp.sum(e, axis=-1, keepdims=True)
    r = pl.reciprocal(s, approx=True)          # EUP slot, nearly free
    r = r * (2.0 - s * r)                      # one Newton step -> ~f32 exact
    out_ref[...] = (e * r).astype(out_ref.dtype)


def attention_forward(hidden, encoder_outputs, w_attn, b_attn, v_w,
                      *, block_b=64, use_bf16=False,
                      vmem_limit_bytes=64 * 1024 * 1024):
    """Mirrors Attention.forward of the PyTorch module.

    hidden          : [batch, dec_hid_dim]
    encoder_outputs : [src_len, batch, 2*enc_hid_dim]
    w_attn          : [dec_hid_dim, 2*enc_hid_dim + dec_hid_dim]
    b_attn          : [dec_hid_dim]
    v_w             : [1, dec_hid_dim]
    returns         : [batch, src_len]  softmax attention weights
    """
    src_len, batch, enc2 = encoder_outputs.shape
    dec = hidden.shape[1]

    hidden = jnp.asarray(hidden, jnp.float32)
    # Keep the (S, B, 2E) HBM layout: the BlockSpec slices the batch axis
    # directly, so no full-tensor transpose pass in HBM.
    enc = jnp.asarray(encoder_outputs, jnp.float32)

    w = jnp.asarray(w_attn, jnp.float32)
    wh = w[:, :dec].T                                   # (dec, dec)  hidden part
    we = w[:, dec:].T                                   # (2E, dec)   encoder part
    bias = jnp.asarray(b_attn, jnp.float32).reshape(1, dec)
    v_row = jnp.asarray(v_w, jnp.float32).reshape(1, dec)

    # Batch block: multiple of 8 so in-kernel reshapes are layout-free.
    # TODO(synk): retune block_b / vmem_limit per chip generation
    #   (v7x: keep 2*Bb*S*2E*dtype <= ~48 MiB and nb >= 2 for both TCs;
    #    v6e/v5e: raise block_b so M = Bb*src_len >= 512 / 128-aligned).
    bb = min(block_b, batch)
    bb = max(8, ((bb + 7) // 8) * 8)
    nb = -(-batch // bb)
    b_pad = nb * bb
    if b_pad != batch:
        hidden = jnp.pad(hidden, ((0, b_pad - batch), (0, 0)))
        enc = jnp.pad(enc, ((0, 0), (0, b_pad - batch), (0, 0)))

    # Hoist the tiny hidden projection (M = batch rows) out of the hot loop.
    hid_proj = hidden @ wh + bias                       # (b_pad, dec), f32

    if use_bf16:
        # Cast MXU operands once in the wrapper (halves HBM->VMEM DMA bytes);
        # element-wise math (tanh/softmax) stays f32 inside the kernel.
        enc = enc.astype(jnp.bfloat16)
        we = we.astype(jnp.bfloat16)

    # Pad the output lane axis up to a multiple of 128 for lane-dense stores.
    s_pad = ((src_len + 127) // 128) * 128

    out = pl.pallas_call(
        _attention_kernel,
        out_shape=jax.ShapeDtypeStruct((b_pad, s_pad), jnp.float32),
        grid=(nb,),
        in_specs=[
            pl.BlockSpec((bb, dec), lambda i: (i, 0)),              # hid_proj block
            pl.BlockSpec((src_len, bb, enc2), lambda i: (0, i, 0)), # encoder slice
            pl.BlockSpec((enc2, dec), lambda i: (0, 0)),            # W_e (resident)
            pl.BlockSpec((1, dec), lambda i: (0, 0)),               # v row (resident)
        ],
        out_specs=pl.BlockSpec((bb, s_pad), lambda i: (i, 0)),      # lane-dense out
        compiler_params=pltpu.CompilerParams(
            dimension_semantics=("parallel",),
            vmem_limit_bytes=vmem_limit_bytes),
    )(hid_proj, enc, we, v_row)

    return out[:batch, :src_len]


def _reference(hidden, encoder_outputs, w_attn, b_attn, v_w):
    """Plain-JAX reference reproducing the PyTorch forward exactly."""
    src_len = encoder_outputs.shape[0]
    batch, dec = hidden.shape
    hid_rep = jnp.broadcast_to(hidden[:, None, :], (batch, src_len, dec))
    enc_bf = jnp.transpose(encoder_outputs, (1, 0, 2))
    cat = jnp.concatenate([hid_rep, enc_bf], axis=2)
    energy = jnp.tanh(jnp.einsum("bsi,oi->bso", cat, w_attn) + b_attn)
    attention = jnp.einsum("bso,oi->bsi", energy, v_w.T)[..., 0]
    return jax.nn.softmax(attention, axis=1)


if __name__ == "__main__":
    # Small, deterministic shapes consistent with the module's forward.
    enc_hid_dim = 16
    dec_hid_dim = 32
    batch = 2
    src_len = 8
    d_in = enc_hid_dim * 2 + dec_hid_dim

    key = jax.random.PRNGKey(0)
    k_h, k_e, k_w, k_b, k_v = jax.random.split(key, 5)

    hidden = jax.random.normal(k_h, (batch, dec_hid_dim), dtype=jnp.float32)
    encoder_outputs = jax.random.normal(
        k_e, (src_len, batch, enc_hid_dim * 2), dtype=jnp.float32
    )

    # Deterministic parameter init (shapes follow nn.Linear in __init__).
    w_attn = jax.random.normal(k_w, (dec_hid_dim, d_in), dtype=jnp.float32) * 0.1
    b_attn = jax.random.normal(k_b, (dec_hid_dim,), dtype=jnp.float32) * 0.1
    v_w = jax.random.normal(k_v, (1, dec_hid_dim), dtype=jnp.float32) * 0.1

    out = attention_forward(hidden, encoder_outputs, w_attn, b_attn, v_w)
    out = jax.block_until_ready(out)

    ref = _reference(hidden, encoder_outputs, w_attn, b_attn, v_w)
    assert out.shape == (batch, src_len)
    assert jnp.allclose(out, ref, atol=1e-4, rtol=1e-4), "mismatch vs reference"
    assert jnp.allclose(jnp.sum(out, axis=1), 1.0, atol=1e-4), "softmax rows must sum to 1"

    print("KERNEL_OK")
</pallas_src>

<mosaic_0001>
module attributes {stable_mosaic.version = 11 : i64} {
  func.func @_attention_kernel(%arg0: i32, %arg1: memref<8x32xf32, #tpu.memory_space<vmem>>, %arg2: memref<8x8x32xf32, #tpu.memory_space<vmem>>, %arg3: memref<32x32xf32, #tpu.memory_space<vmem>>, %arg4: memref<1x32xf32, #tpu.memory_space<vmem>>, %arg5: memref<8x128xf32, #tpu.memory_space<vmem>>) attributes {dimension_semantics = [#tpu.dimension_semantics<parallel>], iteration_bounds = array<i64: 1>, scalar_prefetch = 0 : i64, scratch_operands = 0 : i64, tpu.core_type = #tpu.core_type<tc>, window_params = [{transform_indices = @transform_0, window_bounds = array<i64: 8, 32>}, {transform_indices = @transform_1, window_bounds = array<i64: 8, 8, 32>}, {pipeline_mode = #tpu.pipeline_mode<synchronous>, transform_indices = @transform_2, window_bounds = array<i64: 32, 32>}, {pipeline_mode = #tpu.pipeline_mode<synchronous>, transform_indices = @transform_3, window_bounds = array<i64: 1, 32>}, {transform_indices = @transform_4, window_bounds = array<i64: 8, 128>}]} {
    %c0 = arith.constant 0 : index
    %c0_0 = arith.constant 0 : index
    %c0_1 = arith.constant 0 : index
    %0 = vector.load %arg2[%c0, %c0_0, %c0_1] : memref<8x8x32xf32, #tpu.memory_space<vmem>>, vector<8x8x32xf32>
    %1 = vector.shape_cast %0 : vector<8x8x32xf32> to vector<64x32xf32>
    %c0_2 = arith.constant 0 : index
    %c0_3 = arith.constant 0 : index
    %2 = vector.load %arg3[%c0_2, %c0_3] : memref<32x32xf32, #tpu.memory_space<vmem>>, vector<32x32xf32>
    %cst = arith.constant dense<0.000000e+00> : vector<64x32xf32>
    %3 = tpu.matmul %1, %2, %cst {dimension_numbers = #tpu.dot_dimension_numbers<[1], [0], [0], [1], [0, 0, 1, 1], [], []>} : vector<64x32xf32>, vector<32x32xf32>, vector<64x32xf32> -> vector<64x32xf32>
    %4 = vector.shape_cast %3 : vector<64x32xf32> to vector<8x8x32xf32>
    %c0_4 = arith.constant 0 : index
    %c0_5 = arith.constant 0 : index
    %5 = vector.load %arg1[%c0_4, %c0_5] : memref<8x32xf32, #tpu.memory_space<vmem>>, vector<8x32xf32>
    %6 = vector.shape_cast %5 : vector<8x32xf32> to vector<1x8x32xf32>
    %7 = vector.broadcast %6 : vector<1x8x32xf32> to vector<8x8x32xf32>
    %8 = arith.addf %4, %7 : vector<8x8x32xf32>
    %9 = math.tanh %8 : vector<8x8x32xf32>
    %c0_6 = arith.constant 0 : index
    %c0_7 = arith.constant 0 : index
    %10 = vector.load %arg4[%c0_6, %c0_7] : memref<1x32xf32, #tpu.memory_space<vmem>>, vector<1x32xf32>
    %11 = vector.shape_cast %10 : vector<1x32xf32> to vector<1x1x32xf32>
    %12 = vector.broadcast %11 : vector<1x1x32xf32> to vector<8x8x32xf32>
    %13 = arith.mulf %9, %12 : vector<8x8x32xf32>
    %cst_8 = arith.constant dense<0.000000e+00> : vector<8x8xf32>
    %14 = vector.multi_reduction <add>, %13, %cst_8 [2] : vector<8x8x32xf32> to vector<8x8xf32>
    %15 = tpu.transpose %14, [1, 0] : vector<8x8xf32> -> vector<8x8xf32>
    %cst_9 = arith.constant -1.000000e+30 : f32
    %16 = vector.broadcast %cst_9 : f32 to vector<8x120xf32>
    %17 = tpu.concatenate %15, %16 in 1 : vector<8x8xf32>, vector<8x120xf32> -> vector<8x128xf32>
    %cst_10 = arith.constant dense<0xFF800000> : vector<8xf32>
    %18 = vector.multi_reduction <maximumf>, %17, %cst_10 [1] : vector<8x128xf32> to vector<8xf32>
    %19 = vector.shape_cast %18 : vector<8xf32> to vector<8x1xf32>
    %20 = vector.broadcast %19 : vector<8x1xf32> to vector<8x128xf32>
    %21 = arith.subf %17, %20 : vector<8x128xf32>
    %22 = math.exp %21 : vector<8x128xf32>
    %cst_11 = arith.constant dense<0.000000e+00> : vector<8xf32>
    %23 = vector.multi_reduction <add>, %22, %cst_11 [1] : vector<8x128xf32> to vector<8xf32>
    %24 = vector.shape_cast %23 : vector<8xf32> to vector<8x1xf32>
    %25 = tpu.reciprocal %24 {approx = true} : vector<8x1xf32> -> vector<8x1xf32>
    %26 = arith.mulf %24, %25 : vector<8x1xf32>
    %cst_12 = arith.constant 2.000000e+00 : f32
    %27 = vector.broadcast %cst_12 : f32 to vector<8x1xf32>
    %28 = arith.subf %27, %26 : vector<8x1xf32>
    %29 = arith.mulf %25, %28 : vector<8x1xf32>
    %30 = vector.broadcast %29 : vector<8x1xf32> to vector<8x128xf32>
    %31 = arith.mulf %22, %30 : vector<8x128xf32>
    %c0_13 = arith.constant 0 : index
    %c0_14 = arith.constant 0 : index
    %32 = vector.load %arg5[%c0_13, %c0_14] : memref<8x128xf32, #tpu.memory_space<vmem>>, vector<8x128xf32>
    tpu.vector_store %arg5[%c0_13, %c0_14], %31 {strides = array<i32>} : memref<8x128xf32, #tpu.memory_space<vmem>>, vector<8x128xf32>,
    return
  }
  func.func @transform_0(%arg0: i32) -> (i32, i32) {
    %c0_i32 = arith.constant 0 : i32
    %c0_i32_0 = arith.constant 0 : i32
    return %arg0, %c0_i32 : i32, i32
  }
  func.func @transform_1(%arg0: i32) -> (i32, i32, i32) {
    %c0_i32 = arith.constant 0 : i32
    %c0_i32_0 = arith.constant 0 : i32
    %c0_i32_1 = arith.constant 0 : i32
    return %c0_i32, %arg0, %c0_i32_0 : i32, i32, i32
  }
  func.func @transform_2(%arg0: i32) -> (i32, i32) {
    %c0_i32 = arith.constant 0 : i32
    %c0_i32_0 = arith.constant 0 : i32
    %c0_i32_1 = arith.constant 0 : i32
    return %c0_i32, %c0_i32_0 : i32, i32
  }
  func.func @transform_3(%arg0: i32) -> (i32, i32) {
    %c0_i32 = arith.constant 0 : i32
    %c0_i32_0 = arith.constant 0 : i32
    %c0_i32_1 = arith.constant 0 : i32
    return %c0_i32, %c0_i32_0 : i32, i32
  }
  func.func @transform_4(%arg0: i32) -> (i32, i32) {
    %c0_i32 = arith.constant 0 : i32
    %c0_i32_0 = arith.constant 0 : i32
    return %arg0, %c0_i32 : i32, i32
  }
}

</mosaic_0001>

<bundles_post_ra>
// kernel: tpu_custom_call.1
= control target key start
LH: loop header
LB: loop body
LE: loop exit
PB: predicated region body
PF: predicated region fallthrough
CT: control target
= control target key end

     0   :  { %9 = vsyncpa [#allocation3], 0  ;;  %s701_s0 = inlined_call_operand.hbm [shape: f32[8,32], index: 0, kind: input, shape index: {}]   ;;  %s702_s1 = inlined_call_operand.hbm [shape: f32[8,8,32], index: 1, kind: input, shape index: {}]   ;;  %s703_s2 = inlined_call_operand.hbm [shape: f32[32,32], index: 2, kind: input, shape index: {}]   ;;  %s704_s3 = inlined_call_operand.hbm [shape: f32[1,32], index: 3, kind: input, shape index: {}]   ;;  %s705_s4 = inlined_call_operand.hbm [shape: f32[8,128], index: 4, kind: output, shape index: {}]  }
   0x1   :  { %10 = vsyncpa [#allocation6], 0 }
   0x2   :  { %11 = vsyncpa [#allocation9], 0 }
   0x3   :  { %12 = vsyncpa [#allocation4], 0  ;;  %s587_s15 = smov [#allocation5]   ;;  %s469_s19 = scalar_lea.hbm %s702_s1, 1024 }
   0x4   :  { %s28_s16 = sshll.u32 %s587_s15, 4  ;;  %p470_p0 = scmp.ne.s32.totalorder %s702_s1, %s469_s19  ;;  %s29_s16 = int_to_ptr.vmem [resolvable:$true] %s28_s16 }
   0x5   :  { %p473_p1 = scmp.lt.u32.totalorder %s469_s19, %s702_s1 }
   0x7   :  { %p475_p2 = pnand %p473_p1, %p470_p0 }
   0x9   :  { %478 = shalt.err (!%p475_p2)
}
   0xa   :  { %s479_s24 = scalar_lea.vmem %s29_s16, 1024  ;;  %p484_p4 = scmp.lt.s32.totalorder %s29_s16, %s29_s16 }
   0xb   :  { %p480_p3 = scmp.ne.s32.totalorder %s29_s16, %s479_s24  ;;  %p485_p5 = scmp.lt.s32.totalorder %s479_s24, %s479_s24 }
   0xd   :  { %p486_p6 = por %p485_p5, %p484_p4 }
   0xf   :  { %p487_p7 = pnand %p486_p6, %p480_p3 }
  0x11   :  { %490 = shalt.err (!%p487_p7)
}
  0x12   :  { %s588_s25 = smov 128   ;;  %s589_s26 = smov 8  }
  0x13   :  { %34 = dma.hbm_to_vmem [thread:$0]  %s702_s1, 1024, %s29_s16, [#allocation6], %s588_s25, %s588_s25, %s589_s26  }
  0x14   :  { %s590_s29 = smov [#allocation2]   ;;  %s591_s5 = smov [#allocation7]  }
  0x15   :  { %s19_s30 = sshll.u32 %s590_s29, 4  ;;  %s40_s6 = sshll.u32 %s591_s5, 4  ;;  %s20_s30 = int_to_ptr.vmem [resolvable:$true] %s19_s30  ;;  %s41_s6 = int_to_ptr.vmem [resolvable:$true] %s40_s6 }
  0x16   :  { %s491_s9 = scalar_lea.hbm %s701_s0, 128 }
  0x17   :  { %p492_p8 = scmp.ne.s32.totalorder %s701_s0, %s491_s9  ;;  %p495_p9 = scmp.lt.u32.totalorder %s491_s9, %s701_s0 }
  0x19   :  { %p497_p10 = pnand %p495_p9, %p492_p8 }
  0x1b   :  { %500 = shalt.err (!%p497_p10)
}
  0x1c   :  { %s501_s1 = scalar_lea.vmem %s20_s30, 128  ;;  %p506_p12 = scmp.lt.s32.totalorder %s20_s30, %s20_s30 }
  0x1d   :  { %p502_p11 = scmp.ne.s32.totalorder %s20_s30, %s501_s1  ;;  %p507_p13 = scmp.lt.s32.totalorder %s501_s1, %s501_s1 }
  0x1f   :  { %p508_p0 = por %p507_p13, %p506_p12 }
  0x21   :  { %p509_p1 = pnand %p508_p0, %p502_p11 }
  0x23   :  { %512 = shalt.err (!%p509_p1)
}
  0x24   :  { %22 = dma.hbm_to_vmem [thread:$0]  %s701_s0, 128, %s20_s30, [#allocation3]  }
  0x25   :  { %s513_s18 = scalar_lea.hbm %s703_s2, 512 }
  0x26   :  { %p514_p2 = scmp.ne.s32.totalorder %s703_s2, %s513_s18  ;;  %p517_p3 = scmp.lt.u32.totalorder %s513_s18, %s703_s2 }
  0x28   :  { %p519_p4 = pnand %p517_p3, %p514_p2 }
  0x2a   :  { %522 = shalt.err (!%p519_p4)
}
  0x2b   :  { %s523_s23 = scalar_lea.vmem %s41_s6, 512  ;;  %p528_p6 = scmp.lt.s32.totalorder %s41_s6, %s41_s6 }
  0x2c   :  { %p524_p5 = scmp.ne.s32.totalorder %s41_s6, %s523_s23  ;;  %p529_p7 = scmp.lt.s32.totalorder %s523_s23, %s523_s23 }
  0x2e   :  { %p530_p8 = por %p529_p7, %p528_p6 }
  0x30   :  { %p531_p9 = pnand %p530_p8, %p524_p5 }
  0x32   :  { %534 = shalt.err (!%p531_p9)
}
  0x33   :  { %46 = dma.hbm_to_vmem [thread:$0]  %s703_s2, 512, %s41_s6, [#allocation6], %s588_s25, %s588_s25, %s589_s26  }
  0x34   :  { %s592_s27 = smov [#allocation8]   ;;  %s535_s5 = scalar_lea.hbm %s704_s3, 16 }
  0x35   :  { %s53_s28 = sshll.u32 %s592_s27, 4  ;;  %p536_p10 = scmp.ne.s32.totalorder %s704_s3, %s535_s5  ;;  %s54_s28 = int_to_ptr.vmem [resolvable:$true] %s53_s28 }
  0x36   :  { %p539_p11 = scmp.lt.u32.totalorder %s535_s5, %s704_s3 }
  0x38   :  { %p541_p12 = pnand %p539_p11, %p536_p10 }
  0x3a   :  { %544 = shalt.err (!%p541_p12)
}
  0x3b   :  { %s545_s11 = scalar_lea.vmem %s54_s28, 16  ;;  %s549_s2 = scalar_lea.vmem %s54_s28, 32 }
  0x3c   :  { %p546_p13 = scmp.ne.s32.totalorder %s54_s28, %s545_s11  ;;  %p550_p0 = scmp.lt.s32.totalorder %s54_s28, %s54_s28 }
  0x3d   :  { %p551_p1 = scmp.lt.s32.totalorder %s549_s2, %s545_s11 }
  0x3f   :  { %p552_p2 = por %p551_p1, %p550_p0 }
  0x41   :  { %p553_p3 = pnand %p552_p2, %p546_p13 }
  0x43   :  { %556 = shalt.err (!%p553_p3)
}
  0x44   :  { %56 = dma.hbm_to_vmem [thread:$0]  %s704_s3, 16, %s54_s28, [#allocation9]  }
  0x45   :  { %579 = dma.done.wait [#allocation3], 128  }
  0x46   :  { %580 = vsyncadd [#allocation3], 4294967168 }
  0x47   :  { %581 = dma.done.wait [#allocation6], 1536  }
  0x48   :  { %582 = vsyncadd [#allocation6], 4294965760 }
  0x49   :  { %583 = dma.done.wait [#allocation9], 16  }
  0x4a   :  { %584 = vsyncadd [#allocation9], 4294967280  ;;  %vm81_vm0 = vcmask 261120   ;;  %v77_v0 = vld [vmem:[#allocation7] sm:$0xff]  ;;  %v78_v1 = vld [vmem:[#allocation7 + $0x8] sm:$0xff]  ;;  %v275_v56 = vlaneseq  ;;  %vm309_vm1 = vcmask 1041409  }
  0x4b   :  { %v79_v2 = vld [vmem:[#allocation7 + $0x10] sm:$0xff]  ;;  %v429_v3 = vpack.c.bf16 %v78_v1, %v77_v0  ;;  %v80_v4 = vld [vmem:[#allocation7 + $0x18] sm:$0xff]  ;;  %v69_v5 = vld [vmem:[#allocation5] sm:$0xff]  ;;  %vm311_vm2 = vcmask 1042434   ;;  %vm313_vm3 = vcmask 1043459   ;;  %vm315_vm4 = vcmask 1044484  }
  0x4c   :  { %v433_v6 = vpack.c.bf16 %v80_v4, %v79_v2  ;;  %417 = vmatprep.mubr.msk.f32.mxu0 %vm81_vm0, %v69_v5  ;;  %v73_v7 = vld [vmem:[#allocation5 + $0x20] sm:$0xff]  ;;  %v70_v8 = vld [vmem:[#allocation5 + $0x8] sm:$0xff]  ;;  %v71_v10 = vld [vmem:[#allocation5 + $0x10] sm:$0xff]  ;;  %v276_v57 = vand.u32 127, %v275_v56  ;;  %v278_v58 = vshrl.u32 %v275_v56, 7  ;;  %vm317_vm5 = vcmask 1045509  }
  0x4d   :  { %430 = vmatprep.subr.bf16.mxu0 %v429_v3  ;;  %437 = vmatprep.subr.bf16.mxu1 %v429_v3  ;;  %v74_v9 = vld [vmem:[#allocation5 + $0x28] sm:$0xff]  ;;  %v75_v11 = vld [vmem:[#allocation5 + $0x30] sm:$0xff]  ;;  %v72_v12 = vld [vmem:[#allocation5 + $0x18] sm:$0xff]  ;;  %vm319_vm6 = vcmask 1046534   ;;  %vm321_vm7 = vcmask 1047559   ;;  %vm356_vm8 = vcmask 64512  }
  0x4e   :  { %432 = vmatpush3.bf16.msra.mxu0 %v429_v3  ;;  %439 = vmatpush3.bf16.msra.mxu1 %v429_v3  ;;  %v76_v13 = vld [vmem:[#allocation5 + $0x38] sm:$0xff]  ;;  %v396_v31 = vld [vmem:[#allocation8] ss:$0 sm:$0xff]  ;;  %v279_v60 = vsub.s32 %v276_v57, %v278_v58  ;;  %s593_s3 = smov [#allocation10]  }
  0x4f   :  { %434 = vmatprep.subr.bf16.mxu0 %v433_v6  ;;  %438 = vmatprep.subr.bf16.mxu1 %v433_v6  ;;  %v211_v14 = vld [vmem:[#allocation2] sm:$0xff]  ;;  %s377_s6 = sshll.u32 %s593_s3, 4  ;;  %s378_s6 = int_to_ptr.vmem [resolvable:$true] %s377_s6 }
  0x50   :  { %423 = vmatprep.mubr.msk.f32.mxu1 %vm81_vm0, %v73_v7  ;;  %s557_s12 = scalar_lea.vmem %s378_s6, 128  ;;  %p562_p5 = scmp.lt.s32.totalorder %s378_s6, %s378_s6 }
  0x51   :  { %p558_p4 = scmp.ne.s32.totalorder %s378_s6, %s557_s12  ;;  %p563_p6 = scmp.lt.s32.totalorder %s557_s12, %s557_s12 }
  0x52   :  { %436 = vmatpush3.bf16.msra.mxu0 %v433_v6  ;;  %440 = vmatpush3.bf16.msra.mxu1 %v433_v6 }
  0x53   :  { %p564_p7 = por %p563_p6, %p562_p5 }
  0x55   :  { %418 = vmatmul.mubr.msk.f32.vlgmr.msra.gmra.mrb[0].mxu0 %vm81_vm0, %v70_v8  ;;  %424 = vmatmul.mubr.msk.f32.vlgmr.msra.gmra.mrb[0].mxu1 %vm81_vm0, %v74_v9  ;;  %p565_p8 = pnand %p564_p7, %p558_p4 }
  0x56   :  { %420 = vmatprep.mubr.msk.f32.mxu0 %vm81_vm0, %v71_v10  ;;  %426 = vmatprep.mubr.msk.f32.mxu1 %vm81_vm0, %v75_v11 }
  0x59   :  { %421 = vmatmul.mubr.msk.f32.gmra.mrb[2].mxu0 %vm81_vm0, %v72_v12  ;;  %427 = vmatmul.mubr.msk.f32.gmra.mrb[2].mxu1 %vm81_vm0, %v76_v13 }
 0x128   :  { %v419_v15 = vpop.f32.mrb[0].mxu0  ;;  %v425_v16 = vpop.f32.mrb[0].mxu1 }
 0x129   :  { %v213_v17 = vadd.f32 %v419_v15, %v211_v14  ;;  %v172_v18 = vpop.f32.mrb[1].mxu0  ;;  %v192_v19 = vpop.f32.mrb[1].mxu1  ;;  %v217_v29 = vadd.f32 %v425_v16, %v211_v14 }
 0x12a   :  { %v212_v20 = vadd.f32 %v211_v14, %v172_v18  ;;  %v216_v21 = vadd.f32 %v211_v14, %v192_v19 }
 0x12b   :  { %449 = vtanh.f32 %v213_v17 }
 0x12c   :  { %451 = vtanh.f32 %v212_v20  ;;  %v422_v22 = vpop.f32.mrb[2].mxu0  ;;  %v428_v23 = vpop.f32.mrb[2].mxu1 }
 0x12d   :  { %v215_v24 = vadd.f32 %v422_v22, %v211_v14  ;;  %v182_v25 = vpop.f32.mrb[3].mxu0  ;;  %v202_v26 = vpop.f32.mrb[3].mxu1  ;;  %453 = vtanh.f32 %v216_v21  ;;  %v219_v30 = vadd.f32 %v428_v23, %v211_v14 }
 0x12e   :  { %v214_v27 = vadd.f32 %v211_v14, %v182_v25  ;;  %v218_v28 = vadd.f32 %v211_v14, %v202_v26 }
 0x12f   :  { %455 = vtanh.f32 %v215_v24 }
 0x130   :  { %457 = vtanh.f32 %v214_v27 }
 0x131   :  { %459 = vtanh.f32 %v218_v28 }
 0x132   :  { %461 = vtanh.f32 %v217_v29 }
 0x133   :  { %463 = vtanh.f32 %v219_v30 }
 0x135   :  { %v450_v32 = vpop.eup %449 }
 0x136   :  { %v452_v33 = vpop.eup %451  ;;  %v236_v34 = vmul.f32 %v450_v32, %v396_v31 }
 0x137   :  { %v454_v35 = vpop.eup %453  ;;  %v235_v37 = vmul.f32 %v452_v33, %v396_v31 }
 0x138   :  { %v246_v36 = vsel %vm81_vm0, %v236_v34, 0.0  ;;  %v239_v41 = vmul.f32 %v454_v35, %v396_v31 }
 0x139   :  { %v456_v38 = vpop.eup %455  ;;  %247 = vadd.xlane.f32.xlu0 %v246_v36  ;;  %v243_v43 = vsel %vm81_vm0, %v235_v37, 0.0 }
 0x13a   :  { %v458_v39 = vpop.eup %457  ;;  %v238_v40 = vmul.f32 %v456_v38, %v396_v31  ;;  %v255_v47 = vsel %vm81_vm0, %v239_v41, 0.0 }
 0x13b   :  { %v460_v42 = vpop.eup %459  ;;  %v237_v45 = vmul.f32 %v458_v39, %v396_v31 }
 0x13c   :  { %v252_v44 = vsel %vm81_vm0, %v238_v40, 0.0  ;;  %v462_v46 = vpop.eup %461  ;;  %v241_v48 = vmul.f32 %v460_v42, %v396_v31 }
 0x13d   :  { %244 = vadd.xlane.f32.xlu0 %v243_v43  ;;  %253 = vadd.xlane.f32.xlu1 %v252_v44  ;;  %v249_v49 = vsel %vm81_vm0, %v237_v45, 0.0  ;;  %v240_v50 = vmul.f32 %v462_v46, %v396_v31  ;;  %v464_v51 = vpop.eup %463 }
 0x13e   :  { %v261_v52 = vsel %vm81_vm0, %v241_v48, 0.0  ;;  %v242_v54 = vmul.f32 %v464_v51, %v396_v31 }
 0x13f   :  { %v258_v53 = vsel %vm81_vm0, %v240_v50, 0.0 }
 0x140   :  { %v264_v55 = vsel %vm81_vm0, %v242_v54, 0.0 }
 0x141   :  { %250 = vadd.xlane.f32.xlu1 %v249_v49  ;;  %256 = vadd.xlane.f32.xlu0 %v255_v47 }
 0x145   :  { %259 = vadd.xlane.f32.xlu1 %v258_v53  ;;  %262 = vadd.xlane.f32.xlu0 %v261_v52 }
 0x149   :  { %265 = vadd.xlane.f32.xlu1 %v264_v55 }
 0x1c6   :  { %v248_v59 = vpop.xlane.xlu0 %247 }
 0x1c7   :  { %v284_v0 = vrot.slane %v248_v59, %v279_v60 }
 0x1ca   :  { %v245_v61 = vpop.xlane.xlu0 %244  ;;  %v254_v62 = vpop.xlane.xlu1 %253 }
 0x1cb   :  { %v280_v63 = vrot.slane %v245_v61, %v279_v60  ;;  %v292_v6 = vrot.slane %v254_v62, %v279_v60 }
 0x1cd   :  { %v310_v5 = vsel %vm309_vm1, %v284_v0, %v280_v63 }
 0x1ce   :  { %v251_v1 = vpop.xlane.xlu1 %250  ;;  %v257_v2 = vpop.xlane.xlu0 %256 }
 0x1cf   :  { %v288_v3 = vrot.slane %v251_v1, %v279_v60  ;;  %v296_v4 = vrot.slane %v257_v2, %v279_v60 }
 0x1d1   :  { %v312_v7 = vsel %vm311_vm2, %v288_v3, %v310_v5 }
 0x1d2   :  { %v314_v8 = vsel %vm313_vm3, %v292_v6, %v312_v7  ;;  %v260_v9 = vpop.xlane.xlu1 %259  ;;  %v263_v10 = vpop.xlane.xlu0 %262 }
 0x1d3   :  { %v316_v11 = vsel %vm315_vm4, %v296_v4, %v314_v8  ;;  %v300_v12 = vrot.slane %v260_v9, %v279_v60  ;;  %v304_v13 = vrot.slane %v263_v10, %v279_v60 }
 0x1d5   :  { %v318_v14 = vsel %vm317_vm5, %v300_v12, %v316_v11 }
 0x1d6   :  { %v266_v15 = vpop.xlane.xlu1 %265  ;;  %v320_v17 = vsel %vm319_vm6, %v304_v13, %v318_v14 }
 0x1d7   :  { %v308_v16 = vrot.slane %v266_v15, %v279_v60 }
 0x1d9   :  { %v322_v18 = vsel %vm321_vm7, %v308_v16, %v320_v17 }
 0x1da   :  { %324 = vxpose.xlu0.b32.start.end [1/1] (short) (narrow) %v322_v18, 8 }
 0x25a   :  { %v340_v19 = vpop.trf.xlu0 }
 0x25b   :  { %v357_v20 = vsel %vm356_vm8, %v340_v19, -1e+30 }
 0x25c   :  { %358 = vmax.xlane.f32.xlu1 %v357_v20 }
 0x2e9   :  { %v359_v21 = vpop.xlane.xlu1 %358 }
 0x2ea   :  { %v360_v22 = vsub.f32 %v357_v20, %v359_v21 }
 0x2ec   :  { %v361_v23 = vmul.f32 1.442695, %v360_v22 }
 0x2ee   :  { %465 = vpow2.f32 %v361_v23 }
 0x2f8   :  { %v466_v24 = vpop.eup %465 }
 0x2f9   :  { %363 = vadd.xlane.f32.xlu1 %v466_v24 }
 0x386   :  { %v364_v25 = vpop.xlane.xlu1 %363 }
 0x387   :  { %467 = vrcp.f32 %v364_v25 }
 0x391   :  { %v468_v26 = vpop.eup %467 }
 0x392   :  { %v366_v27 = vmul.f32 %v468_v26, %v364_v25 }
 0x394   :  { %v367_v28 = vsub.f32 2.0, %v366_v27 }
 0x396   :  { %v368_v29 = vmul.f32 %v468_v26, %v367_v28 }
 0x398   :  { %v369_v30 = vmul.f32 %v466_v24, %v368_v29 }
 0x39a   :  { %370 = vst [vmem:[#allocation10] sm:$0xff] %v369_v30 }
 0x39b   :  { %568 = shalt.err (!%p565_p8)
}
 0x39c   :  { %s569_s14 = scalar_lea.hbm %s705_s4, 128 }
 0x39d   :  { %p570_p9 = scmp.ne.s32.totalorder %s705_s4, %s569_s14  ;;  %p573_p10 = scmp.lt.u32.totalorder %s569_s14, %s705_s4 }
 0x39f   :  { %p575_p11 = pnand %p573_p10, %p570_p9 }
 0x3a1   :  { %578 = shalt.err (!%p575_p11)
}
 0x3a2   :  { %380 = dma.vmem_to_hbm [thread:$0]  %s378_s6, 128, %s705_s4, [#allocation4]  }
 0x3a3   :  { %585 = dma.done.wait [#allocation4], 128  }
 0x3a4   :  { %586 = vsyncadd [#allocation4], 4294967168 }
 0x3a5   :  { %384 = vsyncpa [#allocation3], 1 }
 0x3a6   :  { %385 = vsyncpa [#allocation6], 1 }
 0x3a7   :  { %386 = vsyncpa [#allocation9], 1 }
 0x3a8   :  { %387 = vsyncpa [#allocation4], 1 }

</bundles_post_ra>
